<compile_context>
chip_gen: v7x
topology: tpu7x:2x2x1
jax: 0.10.0
libtpu: 0.0.40
codegen_flags: <defaults>
</compile_context>

<pallas_src>
import jax
import jax.numpy as jnp
from jax.experimental import pallas as pl
from jax.experimental.pallas import tpu as pltpu


def _round_up(x, m):
    return ((x + m - 1) // m) * m


def _od_gather_kernel(idx_ref, tbl_t_ref, out_ref):
    """One grid step: gather a tile of embeddings, transposed layout.

    idx_ref   : (1, TILE)      int32   index tile (lane-major)
    tbl_t_ref : (D, V_pad)     float32 transposed embedding table (resident)
    out_ref   : (D, TILE)      float32 output tile (lane-dense: TILE % 128 == 0)
    """
    tile = idx_ref.shape[1]
    v_pad = tbl_t_ref.shape[1]

    ids = idx_ref[...]                                            # (1, TILE)
    node = jax.lax.broadcasted_iota(jnp.int32, (v_pad, tile), 0)  # (V_pad, TILE)
    # one-hot built on the VPU (int32 compare, sublane-broadcast of ids)
    one_hot = (ids == node).astype(tbl_t_ref.dtype)               # (V_pad, TILE)

    # gather == table_T @ one_hot on the MXU, output already lane-dense
    out_ref[...] = jnp.dot(
        tbl_t_ref[...], one_hot, preferred_element_type=jnp.float32
    ).astype(out_ref.dtype)


def od_encoder_forward(ori, dest, emb_table, *, tile_n=256):
    """Pallas implementation of ODEncoder.forward.

    ori, dest : integer arrays of identical shape (e.g. (batch, seq))
    emb_table : (node_num, d_node) float32 embedding weights
    returns   : (emb_o, emb_d), each ori.shape + (d_node,)
    """
    assert ori.shape == dest.shape
    lead_shape = ori.shape
    n = 1
    for s in lead_shape:
        n *= int(s)
    v, d = emb_table.shape

    # ---- wrapper-side layout plumbing (no kernel compute) -------------------
    # pad node axis to a multiple of 128 and transpose the table -> (D, V_pad)
    v_pad = _round_up(v, 128)
    tbl_t = jnp.pad(emb_table, ((0, v_pad - v), (0, 0))).T        # (D, V_pad)

    # fuse the two gathers: one index stream [ori | dest], lane-major (1, M)
    ids = jnp.concatenate(
        [ori.reshape(-1).astype(jnp.int32), dest.reshape(-1).astype(jnp.int32)]
    )
    m = 2 * n
    tile = _round_up(min(tile_n, _round_up(m, 128)), 128)         # >=128, %128==0
    m_pad = _round_up(m, tile)
    ids = jnp.pad(ids, (0, m_pad - m)).reshape(1, m_pad)          # pad rows gather row 0

    grid = (m_pad // tile,)

    out_t = pl.pallas_call(
        _od_gather_kernel,
        out_shape=jax.ShapeDtypeStruct((d, m_pad), emb_table.dtype),
        grid_spec=pltpu.PrefetchScalarGridSpec(
            num_scalar_prefetch=0,
            grid=grid,
            in_specs=[
                pl.BlockSpec((1, tile), lambda i: (0, i)),        # index tile
                pl.BlockSpec((d, v_pad), lambda i: (0, 0)),       # resident table^T
            ],
            out_specs=pl.BlockSpec((d, tile), lambda i: (0, i)),  # lane-dense store
        ),
        compiler_params=pltpu.CompilerParams(
            dimension_semantics=("parallel",),      # shards across TCs on v7x
            vmem_limit_bytes=48 * 1024 * 1024,      # < 64 MiB v7x physical VMEM
        ),
    )(ids, tbl_t)

    emb_all = out_t.T                               # (M_pad, D)
    emb_o = emb_all[:n].reshape(lead_shape + (d,))
    emb_d = emb_all[n:2 * n].reshape(lead_shape + (d,))
    return emb_o, emb_d


if __name__ == "__main__":
    # hparams (synthetic): use_node2vec=False -> nn.Embedding(node_num, d_node)
    node_num = 64   # hparams.node_num
    d_node = 32     # hparams.d_node
    batch, seq = 2, 8

    key = jax.random.PRNGKey(0)
    k_tbl, k_o, k_d = jax.random.split(key, 3)

    # nn.Embedding default init: N(0, 1)
    emb_table = jax.random.normal(k_tbl, (node_num, d_node), dtype=jnp.float32)

    ori = jax.random.randint(k_o, (batch, seq), 0, node_num, dtype=jnp.int32)
    dest = jax.random.randint(k_d, (batch, seq), 0, node_num, dtype=jnp.int32)

    emb_o, emb_d = od_encoder_forward(ori, dest, emb_table)
    jax.block_until_ready((emb_o, emb_d))

    # correctness check against the pure-JAX reference (plain gather)
    ref_o = emb_table[ori]
    ref_d = emb_table[dest]
    assert emb_o.shape == (batch, seq, d_node)
    assert emb_d.shape == (batch, seq, d_node)
    assert jnp.allclose(emb_o, ref_o, atol=1e-6), "emb_o mismatch"
    assert jnp.allclose(emb_d, ref_d, atol=1e-6), "emb_d mismatch"

    print("KERNEL_OK")
</pallas_src>

<mosaic_0001>
module attributes {stable_mosaic.version = 11 : i64} {
  func.func @_od_gather_kernel(%arg0: i32, %arg1: memref<1x128xi32, #tpu.memory_space<vmem>>, %arg2: memref<32x128xf32, #tpu.memory_space<vmem>>, %arg3: memref<32x128xf32, #tpu.memory_space<vmem>>) attributes {dimension_semantics = [#tpu.dimension_semantics<parallel>], iteration_bounds = array<i64: 1>, scalar_prefetch = 0 : i64, scratch_operands = 0 : i64, tpu.core_type = #tpu.core_type<tc>, window_params = [{transform_indices = @transform_0, window_bounds = array<i64: 1, 128>}, {pipeline_mode = #tpu.pipeline_mode<synchronous>, transform_indices = @transform_1, window_bounds = array<i64: 32, 128>}, {transform_indices = @transform_2, window_bounds = array<i64: 32, 128>}]} {
    %c0 = arith.constant 0 : index
    %c0_0 = arith.constant 0 : index
    %0 = vector.load %arg1[%c0, %c0_0] : memref<1x128xi32, #tpu.memory_space<vmem>>, vector<1x128xi32>
    %1 = tpu.iota {dimensions = array<i32: 0>} : vector<128x128xi32>
    %2 = vector.broadcast %0 : vector<1x128xi32> to vector<128x128xi32>
    %3 = arith.cmpi eq, %2, %1 : vector<128x128xi32>
    %4 = arith.extui %3 : vector<128x128xi1> to vector<128x128xi32>
    %5 = arith.sitofp %4 : vector<128x128xi32> to vector<128x128xf32>
    %c0_1 = arith.constant 0 : index
    %c0_2 = arith.constant 0 : index
    %6 = vector.load %arg2[%c0_1, %c0_2] : memref<32x128xf32, #tpu.memory_space<vmem>>, vector<32x128xf32>
    %cst = arith.constant dense<0.000000e+00> : vector<32x128xf32>
    %7 = tpu.matmul %6, %5, %cst {dimension_numbers = #tpu.dot_dimension_numbers<[1], [0], [0], [1], [0, 0, 1, 1], [], []>} : vector<32x128xf32>, vector<128x128xf32>, vector<32x128xf32> -> vector<32x128xf32>
    %c0_3 = arith.constant 0 : index
    %c0_4 = arith.constant 0 : index
    %8 = vector.load %arg3[%c0_3, %c0_4] : memref<32x128xf32, #tpu.memory_space<vmem>>, vector<32x128xf32>
    tpu.vector_store %arg3[%c0_3, %c0_4], %7 {strides = array<i32>} : memref<32x128xf32, #tpu.memory_space<vmem>>, vector<32x128xf32>,
    return
  }
  func.func @transform_0(%arg0: i32) -> (i32, i32) {
    %c0_i32 = arith.constant 0 : i32
    %c0_i32_0 = arith.constant 0 : i32
    return %c0_i32, %arg0 : i32, i32
  }
  func.func @transform_1(%arg0: i32) -> (i32, i32) {
    %c0_i32 = arith.constant 0 : i32
    %c0_i32_0 = arith.constant 0 : i32
    %c0_i32_1 = arith.constant 0 : i32
    return %c0_i32, %c0_i32_0 : i32, i32
  }
  func.func @transform_2(%arg0: i32) -> (i32, i32) {
    %c0_i32 = arith.constant 0 : i32
    %c0_i32_0 = arith.constant 0 : i32
    return %c0_i32, %arg0 : i32, i32
  }
}

</mosaic_0001>

<bundles_post_ra>
// kernel: tpu_custom_call.1
= control target key start
LH: loop header
LB: loop body
LE: loop exit
PB: predicated region body
PF: predicated region fallthrough
CT: control target
= control target key end

     0   :  { %7 = vsyncpa [#allocation3], 0  ;;  %s524_s0 = inlined_call_operand.hbm [shape: s32[1,128], index: 0, kind: input, shape index: {}]   ;;  %s525_s1 = inlined_call_operand.hbm [shape: f32[32,128], index: 1, kind: input, shape index: {}]   ;;  %s526_s2 = inlined_call_operand.hbm [shape: f32[32,128], index: 2, kind: output, shape index: {}]  }
   0x1   :  { %8 = vsyncpa [#allocation6], 0 }
   0x2   :  { %9 = vsyncpa [#allocation4], 0  ;;  %s436_s9 = smov [#allocation2]   ;;  %s437_s11 = smov [#allocation5]  }
   0x3   :  { %s16_s10 = sshll.u32 %s436_s9, 4  ;;  %s25_s12 = sshll.u32 %s437_s11, 4  ;;  %s17_s10 = int_to_ptr.vmem [resolvable:$true] %s16_s10  ;;  %s457_s12 = int_to_ptr.vmem [resolvable:$true] %s25_s12 }
   0x4   :  { %s364_s15 = scalar_lea.hbm %s524_s0, 16 }
   0x5   :  { %p365_p0 = scmp.ne.s32.totalorder %s524_s0, %s364_s15  ;;  %p368_p1 = scmp.lt.u32.totalorder %s364_s15, %s524_s0 }
   0x7   :  { %p370_p2 = pnand %p368_p1, %p365_p0 }
   0x9   :  { %373 = shalt.err (!%p370_p2)
}
   0xa   :  { %s374_s20 = scalar_lea.vmem %s17_s10, 16  ;;  %s378_s21 = scalar_lea.vmem %s17_s10, 32 }
   0xb   :  { %p375_p3 = scmp.ne.s32.totalorder %s17_s10, %s374_s20  ;;  %p379_p4 = scmp.lt.s32.totalorder %s17_s10, %s17_s10 }
   0xc   :  { %p380_p5 = scmp.lt.s32.totalorder %s378_s21, %s374_s20 }
   0xe   :  { %p381_p6 = por %p380_p5, %p379_p4 }
  0x10   :  { %p382_p7 = pnand %p381_p6, %p375_p3 }
  0x12   :  { %385 = shalt.err (!%p382_p7)
}
  0x13   :  { %19 = dma.hbm_to_vmem [thread:$0]  %s524_s0, 16, %s17_s10, [#allocation3]  }
  0x14   :  { %s386_s26 = scalar_lea.hbm %s525_s1, 512 }
  0x15   :  { %p387_p8 = scmp.ne.s32.totalorder %s525_s1, %s386_s26  ;;  %p390_p9 = scmp.lt.u32.totalorder %s386_s26, %s525_s1 }
  0x17   :  { %p392_p10 = pnand %p390_p9, %p387_p8 }
  0x19   :  { %395 = shalt.err (!%p392_p10)
}
  0x1a   :  { %s396_s3 = scalar_lea.vmem %s457_s12, 512  ;;  %p401_p12 = scmp.lt.s32.totalorder %s457_s12, %s457_s12 }
  0x1b   :  { %p397_p11 = scmp.ne.s32.totalorder %s457_s12, %s396_s3  ;;  %p402_p13 = scmp.lt.s32.totalorder %s396_s3, %s396_s3 }
  0x1d   :  { %p403_p0 = por %p402_p13, %p401_p12 }
  0x1f   :  { %p404_p1 = pnand %p403_p0, %p397_p11 }
  0x21   :  { %407 = shalt.err (!%p404_p1)
}
  0x22   :  { %s438_s0 = smov 128   ;;  %s439_s4 = smov 8  }
  0x23   :  { %31 = dma.hbm_to_vmem [thread:$0]  %s525_s1, 512, %s457_s12, [#allocation6], %s438_s0, %s438_s0, %s439_s4  }
  0x24   :  { %430 = dma.done.wait [#allocation3], 16  }
  0x25   :  { %431 = vsyncadd [#allocation3], 4294967280 }
  0x26   :  { %432 = dma.done.wait [#allocation6], 512  }
  0x27   :  { %433 = vsyncadd [#allocation6], 4294966784  ;;  %v39_v0 = vlaneseq  ;;  %v491_v7 = vld [vmem:[#allocation2] ss:$0 sm:$0xff]  ;;  %v108_v8 = vld [vmem:[#allocation5] sm:$0xff]  ;;  %s441_s1 = smov [#allocation7]  }
  0x28   :  { %304 = vmatprep.mubr.f32.mxu0 %v108_v8  ;;  %v110_v9 = vld [vmem:[#allocation5 + $0x10] sm:$0xff]  ;;  %v440_v10 = vmov 1.0|1.0   ;;  %v109_v21 = vld [vmem:[#allocation5 + $0x8] sm:$0xff]  ;;  %v111_v22 = vld [vmem:[#allocation5 + $0x18] sm:$0xff]  ;;  %s206_s7 = sshll.u32 %s441_s1, 4  ;;  %s207_s7 = int_to_ptr.vmem [resolvable:$true] %s206_s7 }
  0x29   :  { %v40_v1 = vshrl.u32 %v39_v0, 7  ;;  %307 = vmatprep.mubr.f32.mxu1 %v110_v9  ;;  %s408_s8 = scalar_lea.vmem %s207_s7, 512  ;;  %p413_p3 = scmp.lt.s32.totalorder %s207_s7, %s207_s7 }
  0x2a   :  { %p409_p2 = scmp.ne.s32.totalorder %s207_s7, %s408_s8  ;;  %p414_p4 = scmp.lt.s32.totalorder %s408_s8, %s408_s8 }
  0x2b   :  { %v41_v2 = vadd.s32 8, %v40_v1  ;;  %v42_v3 = vadd.s32 16, %v40_v1  ;;  %v43_v4 = vadd.s32 24, %v40_v1  ;;  %v44_v5 = vadd.s32 32, %v40_v1 }
  0x2c   :  { %v45_v6 = vadd.s32 40, %v40_v1  ;;  %vm60_vm0 = vcmp.eq.s32.totalorder %v491_v7, %v40_v1  ;;  %v46_v11 = vadd.s32 48, %v40_v1  ;;  %v47_v12 = vadd.s32 56, %v40_v1  ;;  %p415_p5 = por %p414_p4, %p413_p3 }
  0x2d   :  { %vm61_vm1 = vcmp.eq.s32.totalorder %v491_v7, %v41_v2  ;;  %vm62_vm2 = vcmp.eq.s32.totalorder %v491_v7, %v42_v3  ;;  %vm63_vm3 = vcmp.eq.s32.totalorder %v491_v7, %v43_v4  ;;  %vm64_vm6 = vcmp.eq.s32.totalorder %v491_v7, %v44_v5 }
  0x2e   :  { %vm310_vm4 = vmpackc.low %vm61_vm1, %vm60_vm0  ;;  %vm65_vm7 = vcmp.eq.s32.totalorder %v491_v7, %v45_v6  ;;  %vm66_vm9 = vcmp.eq.s32.totalorder %v491_v7, %v46_v11  ;;  %vm67_vm10 = vcmp.eq.s32.totalorder %v491_v7, %v47_v12  ;;  %v48_v13 = vadd.s32 64, %v40_v1  ;;  %p416_p6 = pnand %p415_p5, %p409_p2 }
  0x2f   :  { %311 = vmatprep.subr.msk.bf16.mxu0 %vm310_vm4, %v440_v10  ;;  %342 = vmatprep.subr.msk.bf16.mxu1 %vm310_vm4, %v440_v10  ;;  %vm314_vm5 = vmpackc.low %vm63_vm3, %vm62_vm2  ;;  %v49_v14 = vadd.s32 72, %v40_v1  ;;  %v50_v15 = vadd.s32 80, %v40_v1  ;;  %v51_v16 = vadd.s32 88, %v40_v1  ;;  %v52_v17 = vadd.s32 96, %v40_v1 }
  0x30   :  { %313 = vmatpush3.bf16.msk.msra.mxu0 %vm310_vm4, %v440_v10  ;;  %350 = vmatpush3.bf16.msk.msra.mxu1 %vm310_vm4, %v440_v10  ;;  %vm318_vm8 = vmpackc.low %vm65_vm7, %vm64_vm6  ;;  %vm68_vm12 = vcmp.eq.s32.totalorder %v491_v7, %v48_v13  ;;  %v53_v18 = vadd.s32 104, %v40_v1  ;;  %v54_v19 = vadd.s32 112, %v40_v1  ;;  %v55_v20 = vadd.s32 120, %v40_v1 }
  0x31   :  { %315 = vmatprep.subr.msk.bf16.mxu0 %vm314_vm5, %v440_v10  ;;  %343 = vmatprep.subr.msk.bf16.mxu1 %vm314_vm5, %v440_v10  ;;  %vm322_vm11 = vmpackc.low %vm67_vm10, %vm66_vm9  ;;  %vm69_vm13 = vcmp.eq.s32.totalorder %v491_v7, %v49_v14  ;;  %vm70_vm15 = vcmp.eq.s32.totalorder %v491_v7, %v50_v15  ;;  %vm71_vm0 = vcmp.eq.s32.totalorder %v491_v7, %v51_v16 }
  0x32   :  { %vm326_vm14 = vmpackc.low %vm69_vm13, %vm68_vm12  ;;  %vm72_vm2 = vcmp.eq.s32.totalorder %v491_v7, %v52_v17  ;;  %vm73_vm3 = vcmp.eq.s32.totalorder %v491_v7, %v53_v18  ;;  %vm75_vm6 = vcmp.eq.s32.totalorder %v491_v7, %v55_v20 }
  0x33   :  { %vm330_vm1 = vmpackc.low %vm71_vm0, %vm70_vm15 }
  0x34   :  { %317 = vmatpush3.bf16.msk.msra.mxu0 %vm314_vm5, %v440_v10  ;;  %351 = vmatpush3.bf16.msk.msra.mxu1 %vm314_vm5, %v440_v10  ;;  %vm334_vm4 = vmpackc.low %vm73_vm3, %vm72_vm2  ;;  %vm74_vm5 = vcmp.eq.s32.totalorder %v491_v7, %v54_v19 }
  0x35   :  { %319 = vmatprep.subr.msk.bf16.mxu0 %vm318_vm8, %v440_v10  ;;  %344 = vmatprep.subr.msk.bf16.mxu1 %vm318_vm8, %v440_v10  ;;  %vm338_vm7 = vmpackc.low %vm75_vm6, %vm74_vm5 }
  0x38   :  { %321 = vmatpush3.bf16.msk.msra.mxu0 %vm318_vm8, %v440_v10  ;;  %352 = vmatpush3.bf16.msk.msra.mxu1 %vm318_vm8, %v440_v10 }
  0x39   :  { %323 = vmatprep.subr.msk.bf16.mxu0 %vm322_vm11, %v440_v10  ;;  %345 = vmatprep.subr.msk.bf16.mxu1 %vm322_vm11, %v440_v10 }
  0x3c   :  { %325 = vmatpush3.bf16.msk.msra.mxu0 %vm322_vm11, %v440_v10  ;;  %353 = vmatpush3.bf16.msk.msra.mxu1 %vm322_vm11, %v440_v10 }
  0x3d   :  { %327 = vmatprep.subr.msk.bf16.mxu0 %vm326_vm14, %v440_v10  ;;  %346 = vmatprep.subr.msk.bf16.mxu1 %vm326_vm14, %v440_v10 }
  0x40   :  { %329 = vmatpush3.bf16.msk.msra.mxu0 %vm326_vm14, %v440_v10  ;;  %354 = vmatpush3.bf16.msk.msra.mxu1 %vm326_vm14, %v440_v10 }
  0x41   :  { %331 = vmatprep.subr.msk.bf16.mxu0 %vm330_vm1, %v440_v10  ;;  %347 = vmatprep.subr.msk.bf16.mxu1 %vm330_vm1, %v440_v10 }
  0x44   :  { %333 = vmatpush3.bf16.msk.msra.mxu0 %vm330_vm1, %v440_v10  ;;  %355 = vmatpush3.bf16.msk.msra.mxu1 %vm330_vm1, %v440_v10 }
  0x45   :  { %335 = vmatprep.subr.msk.bf16.mxu0 %vm334_vm4, %v440_v10  ;;  %348 = vmatprep.subr.msk.bf16.mxu1 %vm334_vm4, %v440_v10 }
  0x48   :  { %337 = vmatpush3.bf16.msk.msra.mxu0 %vm334_vm4, %v440_v10  ;;  %356 = vmatpush3.bf16.msk.msra.mxu1 %vm334_vm4, %v440_v10 }
  0x49   :  { %339 = vmatprep.subr.msk.bf16.mxu0 %vm338_vm7, %v440_v10  ;;  %349 = vmatprep.subr.msk.bf16.mxu1 %vm338_vm7, %v440_v10 }
  0x4c   :  { %341 = vmatpush3.bf16.msk.msra.mxu0 %vm338_vm7, %v440_v10  ;;  %357 = vmatpush3.bf16.msk.msra.mxu1 %vm338_vm7, %v440_v10 }
  0x4f   :  { %305 = vmatmul.mubr.f32.vlgmr.msra.gmra.mrb[0].mxu0 %v109_v21  ;;  %308 = vmatmul.mubr.f32.vlgmr.msra.gmra.mrb[0].mxu1 %v111_v22 }
 0x122   :  { %v306_v23 = vpop.f32.mrb[0].mxu0  ;;  %v309_v24 = vpop.f32.mrb[0].mxu1 }
 0x123   :  { %198 = vst [vmem:[#allocation7 + $0x8] sm:$0xff] %v306_v23  ;;  %200 = vst [vmem:[#allocation7 + $0x18] sm:$0xff] %v309_v24  ;;  %v178_v25 = vpop.f32.mrb[1].mxu0  ;;  %v188_v26 = vpop.f32.mrb[1].mxu1 }
 0x124   :  { %197 = vst [vmem:[#allocation7] sm:$0xff] %v178_v25  ;;  %199 = vst [vmem:[#allocation7 + $0x10] sm:$0xff] %v188_v26 }
 0x125   :  { %419 = shalt.err (!%p416_p6)
}
 0x126   :  { %s420_s11 = scalar_lea.hbm %s526_s2, 512 }
 0x127   :  { %p421_p7 = scmp.ne.s32.totalorder %s526_s2, %s420_s11  ;;  %p424_p8 = scmp.lt.u32.totalorder %s420_s11, %s526_s2 }
 0x129   :  { %p426_p9 = pnand %p424_p8, %p421_p7 }
 0x12b   :  { %429 = shalt.err (!%p426_p9)
}
 0x12c   :  { %212 = dma.vmem_to_hbm [thread:$0]  %s207_s7, 512, %s526_s2, [#allocation4], %s438_s0, %s438_s0, %s439_s4  }
 0x12d   :  { %434 = dma.done.wait [#allocation4], 512  }
 0x12e   :  { %435 = vsyncadd [#allocation4], 4294966784 }
 0x12f   :  { %216 = vsyncpa [#allocation3], 1 }
 0x130   :  { %217 = vsyncpa [#allocation6], 1 }
 0x131   :  { %218 = vsyncpa [#allocation4], 1 }

</bundles_post_ra>
